<compile_context>
chip_gen: v6e
topology: v6e:2x2x1
jax: 0.10.0
libtpu: 0.0.40
codegen_flags: <defaults>
</compile_context>

<pallas_src>
import jax
import jax.numpy as jnp
from jax.experimental import pallas as pl
from jax.experimental.pallas import tpu as pltpu


def _pick_tm(m, pref):
    tm = min(pref, m)
    while m % tm:
        tm -= 1
    return tm


# ---------------------------------------------------------------------------
# Pallas kernels
# ---------------------------------------------------------------------------
def _matmul_bias_kernel(a_ref, b_ref, bias_ref, o_ref):
    a = a_ref[...].astype(jnp.bfloat16)
    o_ref[...] = (jnp.dot(a, b_ref[...], preferred_element_type=jnp.float32)
                  + bias_ref[...])


def matmul_bias(a, b_bf16, bias, tm=1024):
    """(M, K) @ (K, N) + bias; A cast to bf16 in-kernel, f32 accumulation."""
    M, K = a.shape
    _, N = b_bf16.shape
    tm = _pick_tm(M, tm)
    return pl.pallas_call(
        _matmul_bias_kernel,
        out_shape=jax.ShapeDtypeStruct((M, N), jnp.float32),
        grid_spec=pltpu.PrefetchScalarGridSpec(
            num_scalar_prefetch=0,
            grid=(M // tm,),
            in_specs=[pl.BlockSpec((tm, K), lambda i: (i, 0)),
                      pl.BlockSpec((K, N), lambda i: (0, 0)),
                      pl.BlockSpec((1, N), lambda i: (0, 0))],
            out_specs=pl.BlockSpec((tm, N), lambda i: (i, 0))),
        compiler_params=pltpu.CompilerParams(
            dimension_semantics=("parallel",)),
    )(a, b_bf16, bias.reshape(1, N))


def _make_conv3x3_kernel(n_inputs, dhw, cout):
    D, H, W = dhw
    DHW = D * H * W

    def kernel(*refs):
        x_refs = refs[:n_inputs]                    # padded NDHWC slabs (f32)
        w_refs = refs[n_inputs:2 * n_inputs]        # (27, Ci, Cout) bf16
        bias_ref = refs[2 * n_inputs]               # (1, Cout) f32
        y_ref = refs[2 * n_inputs + 1]              # (DHW, Cout) f32
        stats_ref = refs[2 * n_inputs + 2]          # (2, Cout) f32

        acc = jnp.zeros((DHW, cout), jnp.float32)
        for kd in range(3):                         # 27 taps, fully unrolled
            for kh in range(3):
                for kw in range(3):
                    t = (kd * 3 + kh) * 3 + kw
                    for x_ref, w_ref in zip(x_refs, w_refs):
                        tap = x_ref[kd:kd + D, kh:kh + H, kw:kw + W, :]
                        a = tap.reshape(DHW, tap.shape[-1]).astype(jnp.bfloat16)
                        acc = acc + jnp.dot(
                            a, w_ref[t], preferred_element_type=jnp.float32)
        y = acc + bias_ref[...]
        y_ref[...] = y
        stats_ref[...] = jnp.concatenate(
            [jnp.sum(y, axis=0, keepdims=True),
             jnp.sum(y * y, axis=0, keepdims=True)], axis=0)

    return kernel


def conv3d_3x3_bias_stats(xs_padded, ws_bf16, bias, dhw, cout):
    """Fused 3x3x3 conv (27 accumulated MXU taps) + bias + BN batch stats.

    xs_padded: list of (N, D+2, H+2, W+2, Ci) f32 inputs whose channels are
               logically concatenated (reduction is split -> no `cat` in HBM).
    ws_bf16:   matching list of (27, Ci, cout) bf16 weights.
    Returns y (N*D*H*W, cout) f32 pre-BN activations, stats (N, 2, cout).
    """
    N = xs_padded[0].shape[0]
    D, H, W = dhw
    DHW = D * H * W

    in_specs = []
    for xp in xs_padded:
        ci = xp.shape[-1]
        in_specs.append(
            pl.BlockSpec((None, D + 2, H + 2, W + 2, ci),
                         lambda n: (n, 0, 0, 0, 0)))
    for w in ws_bf16:
        in_specs.append(pl.BlockSpec(w.shape, lambda n: (0, 0, 0)))
    in_specs.append(pl.BlockSpec((1, cout), lambda n: (0, 0)))

    out_specs = [pl.BlockSpec((DHW, cout), lambda n: (n, 0)),
                 pl.BlockSpec((None, 2, cout), lambda n: (n, 0, 0))]
    out_shape = (jax.ShapeDtypeStruct((N * DHW, cout), jnp.float32),
                 jax.ShapeDtypeStruct((N, 2, cout), jnp.float32))

    y, stats = pl.pallas_call(
        _make_conv3x3_kernel(len(xs_padded), dhw, cout),
        out_shape=out_shape,
        grid_spec=pltpu.PrefetchScalarGridSpec(
            num_scalar_prefetch=0,
            grid=(N,),
            in_specs=in_specs,
            out_specs=out_specs),
        compiler_params=pltpu.CompilerParams(
            dimension_semantics=("parallel",)),
    )(*xs_padded, *ws_bf16, bias.reshape(1, cout))
    return y, stats


def _bn_relu_kernel(y_ref, scale_ref, shift_ref, o_ref):
    o_ref[...] = jnp.maximum(y_ref[...] * scale_ref[...] + shift_ref[...], 0.0)


def bn_relu(y, scale, shift, tm=1024):
    """relu(y * scale + shift) with per-channel scale/shift, lane-dense."""
    M, C = y.shape
    if 128 % C == 0 and M % (128 // C) == 0:
        r = 128 // C                      # fold rows -> 128 output lanes
    else:
        r = 1
    y2 = y.reshape(M // r, r * C)         # free: same row-major HBM bytes
    scale2 = jnp.tile(scale, r).reshape(1, r * C)
    shift2 = jnp.tile(shift, r).reshape(1, r * C)
    Mr, Cr = y2.shape
    tm = _pick_tm(Mr, tm)
    out = pl.pallas_call(
        _bn_relu_kernel,
        out_shape=jax.ShapeDtypeStruct((Mr, Cr), jnp.float32),
        grid_spec=pltpu.PrefetchScalarGridSpec(
            num_scalar_prefetch=0,
            grid=(Mr // tm,),
            in_specs=[pl.BlockSpec((tm, Cr), lambda i: (i, 0)),
                      pl.BlockSpec((1, Cr), lambda i: (0, 0)),
                      pl.BlockSpec((1, Cr), lambda i: (0, 0))],
            out_specs=pl.BlockSpec((tm, Cr), lambda i: (i, 0))),
        compiler_params=pltpu.CompilerParams(
            dimension_semantics=("parallel",)),
    )(y2, scale2, shift2)
    return out.reshape(M, C)


# ---------------------------------------------------------------------------
# Module forward, built from the kernels above (+ small JAX glue)
# ---------------------------------------------------------------------------
def conv_transpose3d_k2s2(x, w, b):
    """nn.ConvTranspose3d(Cin, Cout, kernel=2, stride=2) on NDHWC input.

    stride == kernel => each input voxel maps to a disjoint 2x2x2 output
    block: one (M, Cin) @ (Cin, 8*Cout) Pallas matmul (lane-dense output).
    """
    N, Dl, Hl, Wl, Ci = x.shape
    Co = w.shape[1]
    w2 = (jnp.transpose(w, (0, 2, 3, 4, 1))
          .reshape(Ci, 8 * Co).astype(jnp.bfloat16))
    b2 = jnp.tile(b, 8)
    y = matmul_bias(x.reshape(N * Dl * Hl * Wl, Ci), w2, b2)   # (M, 8*Co)
    # TODO(synk): pixel-shuffle scatter is left to XLA (tiny tensor); fusing
    # it into the next conv's input load would save one small HBM round trip.
    y = y.reshape(N, Dl, Hl, Wl, 2, 2, 2, Co)
    y = jnp.transpose(y, (0, 1, 4, 2, 5, 3, 6, 7))
    return y.reshape(N, 2 * Dl, 2 * Hl, 2 * Wl, Co)


def _bn_scale_shift(stats, m, gamma, beta, eps=1e-5):
    """Torch train-mode BN: biased batch variance -> per-channel scale/shift."""
    s = jnp.sum(stats, axis=0)            # reduce per-batch partials: (2, C)
    mean = s[0] / m
    var = s[1] / m - mean * mean
    scale = gamma / jnp.sqrt(var + eps)
    shift = beta - mean * scale
    return scale, shift


_PAD1 = ((0, 0), (1, 1), (1, 1), (1, 1), (0, 0))


def decoder_block(skip, x, p, eps=1e-5):
    """skip: (N, 2D, 2H, 2W, Cin//2); x: (N, D, H, W, Cin); both NDHWC."""
    N, Dl, Hl, Wl, Cin = x.shape
    D, H, W = 2 * Dl, 2 * Hl, 2 * Wl
    M = N * D * H * W
    Cs = skip.shape[-1]
    Cout = p["w1"].shape[0]

    # 1) upsample (ConvTranspose3d k2s2)
    up = conv_transpose3d_k2s2(x, p["up_w"], p["up_b"])

    # 2) conv1 + bias + BN-stats; torch.cat((skip, up), 1) fused by splitting
    #    the channel reduction over the two inputs (skip channels first).
    w1 = jnp.transpose(p["w1"], (2, 3, 4, 1, 0)).reshape(27, Cs + Cin // 2, Cout)
    w1s = w1[:, :Cs, :].astype(jnp.bfloat16)
    w1u = w1[:, Cs:, :].astype(jnp.bfloat16)
    y1, st1 = conv3d_3x3_bias_stats(
        [jnp.pad(skip, _PAD1), jnp.pad(up, _PAD1)], [w1s, w1u],
        p["b1"], (D, H, W), Cout)
    sc1, sh1 = _bn_scale_shift(st1, float(M), p["g1"], p["be1"], eps)
    h1 = bn_relu(y1, sc1, sh1)                               # (M, Cout)

    # 3) conv2 + bias + BN-stats, then final BN affine + ReLU (lane-dense)
    w2 = (jnp.transpose(p["w2"], (2, 3, 4, 1, 0))
          .reshape(27, Cout, Cout).astype(jnp.bfloat16))
    y2, st2 = conv3d_3x3_bias_stats(
        [jnp.pad(h1.reshape(N, D, H, W, Cout), _PAD1)], [w2],
        p["b2"], (D, H, W), Cout)
    sc2, sh2 = _bn_scale_shift(st2, float(M), p["g2"], p["be2"], eps)
    h2 = bn_relu(y2, sc2, sh2)
    return h2.reshape(N, D, H, W, Cout)


# ---------------------------------------------------------------------------
if __name__ == "__main__":
    key = jax.random.PRNGKey(0)
    in_channels, out_channels = 32, 32
    N, Dl, Hl, Wl = 2, 4, 4, 4                   # low-res input to upsample
    ks = jax.random.split(key, 8)

    # PyTorch-layout inputs (NCDHW) -> kernel layout NDHWC.
    x_nc = jax.random.normal(ks[0], (N, in_channels, Dl, Hl, Wl), jnp.float32)
    skip_nc = jax.random.normal(
        ks[1], (N, in_channels // 2, 2 * Dl, 2 * Hl, 2 * Wl), jnp.float32)

    params = {
        # ConvTranspose3d(in, in//2, 2, stride=2): weight (Cin, Cout, 2, 2, 2)
        "up_w": 0.1 * jax.random.normal(
            ks[2], (in_channels, in_channels // 2, 2, 2, 2), jnp.float32),
        "up_b": 0.1 * jax.random.normal(
            ks[3], (in_channels // 2,), jnp.float32),
        # ResidualBlock conv1: Conv3d(in, out, 3, pad=1)
        "w1": 0.1 * jax.random.normal(
            ks[4], (out_channels, in_channels, 3, 3, 3), jnp.float32),
        "b1": 0.1 * jax.random.normal(ks[5], (out_channels,), jnp.float32),
        "g1": jnp.ones((out_channels,), jnp.float32),    # BN gamma (torch init)
        "be1": jnp.zeros((out_channels,), jnp.float32),  # BN beta
        # ResidualBlock conv2: Conv3d(out, out, 3, pad=1)
        "w2": 0.1 * jax.random.normal(
            ks[6], (out_channels, out_channels, 3, 3, 3), jnp.float32),
        "b2": 0.1 * jax.random.normal(ks[7], (out_channels,), jnp.float32),
        "g2": jnp.ones((out_channels,), jnp.float32),
        "be2": jnp.zeros((out_channels,), jnp.float32),
    }

    x = jnp.transpose(x_nc, (0, 2, 3, 4, 1))      # NCDHW -> NDHWC
    skip = jnp.transpose(skip_nc, (0, 2, 3, 4, 1))

    out = decoder_block(skip, x, params)
    out = jax.block_until_ready(out)

    assert out.shape == (N, 2 * Dl, 2 * Hl, 2 * Wl, out_channels), out.shape
    assert bool(jnp.all(jnp.isfinite(out)))
    assert bool(jnp.all(out >= 0.0))              # post-ReLU
    print("KERNEL_OK")
</pallas_src>

<mosaic_0001>
module attributes {stable_mosaic.version = 11 : i64} {
  func.func @_matmul_bias_kernel(%arg0: i32, %arg1: memref<128x32xf32, #tpu.memory_space<vmem>>, %arg2: memref<32x128xbf16, #tpu.memory_space<vmem>>, %arg3: memref<1x128xf32, #tpu.memory_space<vmem>>, %arg4: memref<128x128xf32, #tpu.memory_space<vmem>>) attributes {dimension_semantics = [#tpu.dimension_semantics<parallel>], iteration_bounds = array<i64: 1>, scalar_prefetch = 0 : i64, scratch_operands = 0 : i64, tpu.core_type = #tpu.core_type<tc>, window_params = [{transform_indices = @transform_0, window_bounds = array<i64: 128, 32>}, {pipeline_mode = #tpu.pipeline_mode<synchronous>, transform_indices = @transform_1, window_bounds = array<i64: 32, 128>}, {pipeline_mode = #tpu.pipeline_mode<synchronous>, transform_indices = @transform_2, window_bounds = array<i64: 1, 128>}, {transform_indices = @transform_3, window_bounds = array<i64: 128, 128>}]} {
    %c0 = arith.constant 0 : index
    %c0_0 = arith.constant 0 : index
    %0 = vector.load %arg1[%c0, %c0_0] : memref<128x32xf32, #tpu.memory_space<vmem>>, vector<128x32xf32>
    %1 = arith.truncf %0 : vector<128x32xf32> to vector<128x32xbf16>
    %c0_1 = arith.constant 0 : index
    %c0_2 = arith.constant 0 : index
    %2 = vector.load %arg2[%c0_1, %c0_2] : memref<32x128xbf16, #tpu.memory_space<vmem>>, vector<32x128xbf16>
    %cst = arith.constant dense<0.000000e+00> : vector<128x128xf32>
    %3 = tpu.matmul %1, %2, %cst {dimension_numbers = #tpu.dot_dimension_numbers<[1], [0], [0], [1], [0, 0, 1, 1], [], []>} : vector<128x32xbf16>, vector<32x128xbf16>, vector<128x128xf32> -> vector<128x128xf32>
    %c0_3 = arith.constant 0 : index
    %c0_4 = arith.constant 0 : index
    %4 = vector.load %arg3[%c0_3, %c0_4] : memref<1x128xf32, #tpu.memory_space<vmem>>, vector<1x128xf32>
    %5 = vector.broadcast %4 : vector<1x128xf32> to vector<128x128xf32>
    %6 = arith.addf %3, %5 : vector<128x128xf32>
    %c0_5 = arith.constant 0 : index
    %c0_6 = arith.constant 0 : index
    %7 = vector.load %arg4[%c0_5, %c0_6] : memref<128x128xf32, #tpu.memory_space<vmem>>, vector<128x128xf32>
    tpu.vector_store %arg4[%c0_5, %c0_6], %6 {strides = array<i32>} : memref<128x128xf32, #tpu.memory_space<vmem>>, vector<128x128xf32>,
    return
  }
  func.func @transform_0(%arg0: i32) -> (i32, i32) {
    %c0_i32 = arith.constant 0 : i32
    %c0_i32_0 = arith.constant 0 : i32
    return %arg0, %c0_i32 : i32, i32
  }
  func.func @transform_1(%arg0: i32) -> (i32, i32) {
    %c0_i32 = arith.constant 0 : i32
    %c0_i32_0 = arith.constant 0 : i32
    %c0_i32_1 = arith.constant 0 : i32
    return %c0_i32, %c0_i32_0 : i32, i32
  }
  func.func @transform_2(%arg0: i32) -> (i32, i32) {
    %c0_i32 = arith.constant 0 : i32
    %c0_i32_0 = arith.constant 0 : i32
    %c0_i32_1 = arith.constant 0 : i32
    return %c0_i32, %c0_i32_0 : i32, i32
  }
  func.func @transform_3(%arg0: i32) -> (i32, i32) {
    %c0_i32 = arith.constant 0 : i32
    %c0_i32_0 = arith.constant 0 : i32
    return %arg0, %c0_i32 : i32, i32
  }
}

</mosaic_0001>

<bundles_post_ra>
// kernel: tpu_custom_call.1
= control target key start
LH: loop header
LB: loop body
LE: loop exit
PB: predicated region body
PF: predicated region fallthrough
CT: control target
= control target key end

     0   :  { %vm63_vm0 = vcmask 261120   ;;  %s380_s0 = inlined_call_operand.vmem [shape: f32[128,32], index: 0, kind: input, shape index: {}]   ;;  %s381_s1 = inlined_call_operand.vmem [shape: bf16[32,128], index: 1, kind: input, shape index: {}]   ;;  %s382_s2 = inlined_call_operand.vmem [shape: f32[1,128], index: 2, kind: input, shape index: {}]   ;;  %s383_s3 = inlined_call_operand.hbm [shape: f32[128,128], index: 3, kind: output, shape index: {}]  }
   0x1   :  { %v265_v0 = vld [vmem:[%s381_s1 + $0x8] sm:$0xff]   ;;  %v266_v1 = vld [vmem:[%s381_s1] sm:$0xff]   ;;  %v18_v7 = vld [vmem:[%s380_s0 + $0x10] sm:$0xff] }
   0x2   :  { %238 = vmatprep.subr.bf16.mxu0 %v265_v0  ;;  %258 = vmatprep.subr.bf16.mxu1 %v265_v0  ;;  %v16_v2 = vld [vmem:[%s380_s0] sm:$0xff]  ;;  %v17_v3 = vld [vmem:[%s380_s0 + $0x8] sm:$0xff]  ;;  %v19_v8 = vld [vmem:[%s380_s0 + $0x18] sm:$0xff] }
   0x3   :  { %v24_v4 = vld [vmem:[%s380_s0 + $0x40] sm:$0xff]  ;;  %239 = vmatpush3.bf16.msra.mxu0 %v265_v0  ;;  %260 = vmatpush3.bf16.msra.mxu1 %v265_v0  ;;  %v32_v5 = vpack.c.bf16 %v17_v3, %v16_v2  ;;  %v25_v6 = vld [vmem:[%s380_s0 + $0x48] sm:$0xff]  ;;  %v26_v10 = vld [vmem:[%s380_s0 + $0x50] sm:$0xff]  ;;  %v33_v16 = vpack.c.bf16 %v19_v8, %v18_v7 }
   0x4   :  { %240 = vmatprep.subr.bf16.mxu0 %v266_v1  ;;  %259 = vmatprep.subr.bf16.mxu1 %v266_v1  ;;  %v36_v9 = vpack.c.bf16 %v25_v6, %v24_v4  ;;  %v27_v11 = vld [vmem:[%s380_s0 + $0x58] sm:$0xff]  ;;  %v20_v12 = vld [vmem:[%s380_s0 + $0x20] sm:$0xff]  ;;  %v21_v13 = vld [vmem:[%s380_s0 + $0x28] sm:$0xff] }
   0x5   :  { %242 = vmatprep.mubr.msk.bf16.mxu0 %vm63_vm0, %v32_v5  ;;  %v28_v14 = vld [vmem:[%s380_s0 + $0x60] sm:$0xff]  ;;  %v29_v15 = vld [vmem:[%s380_s0 + $0x68] sm:$0xff]  ;;  %v37_v17 = vpack.c.bf16 %v27_v11, %v26_v10  ;;  %v34_v18 = vpack.c.bf16 %v21_v13, %v20_v12 }
   0x6   :  { %250 = vmatprep.mubr.msk.bf16.mxu1 %vm63_vm0, %v36_v9  ;;  %v38_v19 = vpack.c.bf16 %v29_v15, %v28_v14 }
   0x7   :  { %241 = vmatpush3.bf16.msra.mxu0 %v266_v1  ;;  %261 = vmatpush3.bf16.msra.mxu1 %v266_v1 }
   0x8   :  { %8 = vsyncpa [#allocation3], 0  ;;  %v22_v20 = vld [vmem:[%s380_s0 + $0x30] sm:$0xff]  ;;  %v23_v21 = vld [vmem:[%s380_s0 + $0x38] sm:$0xff] }
   0x9   :  { %v30_v22 = vld [vmem:[%s380_s0 + $0x70] sm:$0xff]  ;;  %v31_v23 = vld [vmem:[%s380_s0 + $0x78] sm:$0xff]  ;;  %v35_v24 = vpack.c.bf16 %v23_v21, %v22_v20  ;;  %v217_v26 = vld [vmem:[%s382_s2] ss:$0 sm:$0xff]  ;;  %s289_s0 = smov [#allocation2]  }
   0xa   :  { %243 = vmatmul.mubr.msk.bf16.vlgmr.msra.gmra.mxu0 %vm63_vm0, %v33_v16  ;;  %251 = vmatmul.mubr.msk.bf16.vlgmr.msra.gmra.mxu1 %vm63_vm0, %v37_v17  ;;  %v39_v25 = vpack.c.bf16 %v31_v23, %v30_v22  ;;  %s206_s2 = sshll.u32 %s289_s0, 4  ;;  %s207_s2 = int_to_ptr.vmem [resolvable:$true] %s206_s2 }
   0xb   :  { %246 = vmatprep.mubr.msk.bf16.mxu0 %vm63_vm0, %v34_v18  ;;  %254 = vmatprep.mubr.msk.bf16.mxu1 %vm63_vm0, %v38_v19  ;;  %s267_s22 = scalar_lea.vmem %s207_s2, 2048  ;;  %p272_p1 = scmp.lt.s32.totalorder %s207_s2, %s207_s2 }
   0xc   :  { %p268_p0 = scmp.ne.s32.totalorder %s207_s2, %s267_s22  ;;  %p273_p2 = scmp.lt.s32.totalorder %s267_s22, %s267_s22 }
   0xe   :  { %p274_p3 = por %p273_p2, %p272_p1 }
  0x10   :  { %p275_p4 = pnand %p274_p3, %p268_p0 }
  0x12   :  { %247 = vmatmul.mubr.msk.bf16.gmra.mxu0 %vm63_vm0, %v35_v24  ;;  %255 = vmatmul.mubr.msk.bf16.gmra.mxu1 %vm63_vm0, %v39_v25 }
  0xca   :  { %v244_v27 = vpop.f32.mrf.mxu0  ;;  %v252_v28 = vpop.f32.mrf.mxu1 }
  0xcb   :  { %v131_v29 = vadd.f32 %v244_v27, %v217_v26  ;;  %v163_v30 = vadd.f32 %v252_v28, %v217_v26 }
  0xcc   :  { %v122_v31 = vpop.f32.mrf.mxu0  ;;  %v154_v32 = vpop.f32.mrf.mxu1 }
  0xcd   :  { %187 = vst [vmem:[#allocation2 + $0x10] sm:$0xff] %v131_v29  ;;  %195 = vst [vmem:[#allocation2 + $0x50] sm:$0xff] %v163_v30  ;;  %v123_v33 = vadd.f32 %v217_v26, %v122_v31  ;;  %v155_v34 = vadd.f32 %v217_v26, %v154_v32 }
  0xce   :  { %v245_v35 = vpop.f32.mrf.mxu0  ;;  %v253_v36 = vpop.f32.mrf.mxu1 }
  0xcf   :  { %185 = vst [vmem:[#allocation2] sm:$0xff] %v123_v33  ;;  %193 = vst [vmem:[#allocation2 + $0x40] sm:$0xff] %v155_v34  ;;  %v134_v37 = vadd.f32 %v245_v35, %v217_v26  ;;  %v166_v38 = vadd.f32 %v253_v36, %v217_v26 }
  0xd0   :  { %v125_v39 = vpop.f32.mrf.mxu0  ;;  %v157_v40 = vpop.f32.mrf.mxu1 }
  0xd1   :  { %188 = vst [vmem:[#allocation2 + $0x18] sm:$0xff] %v134_v37  ;;  %196 = vst [vmem:[#allocation2 + $0x58] sm:$0xff] %v166_v38  ;;  %v126_v41 = vadd.f32 %v217_v26, %v125_v39  ;;  %v158_v42 = vadd.f32 %v217_v26, %v157_v40 }
  0xd2   :  { %v248_v43 = vpop.f32.mrf.mxu0  ;;  %v256_v44 = vpop.f32.mrf.mxu1 }
  0xd3   :  { %186 = vst [vmem:[#allocation2 + $0x8] sm:$0xff] %v126_v41  ;;  %194 = vst [vmem:[#allocation2 + $0x48] sm:$0xff] %v158_v42  ;;  %v147_v45 = vadd.f32 %v248_v43, %v217_v26  ;;  %v179_v46 = vadd.f32 %v256_v44, %v217_v26 }
  0xd4   :  { %v138_v47 = vpop.f32.mrf.mxu0  ;;  %v170_v48 = vpop.f32.mrf.mxu1 }
  0xd5   :  { %191 = vst [vmem:[#allocation2 + $0x30] sm:$0xff] %v147_v45  ;;  %199 = vst [vmem:[#allocation2 + $0x70] sm:$0xff] %v179_v46  ;;  %v139_v49 = vadd.f32 %v217_v26, %v138_v47  ;;  %v171_v50 = vadd.f32 %v217_v26, %v170_v48 }
  0xd6   :  { %v249_v51 = vpop.f32.mrf.mxu0  ;;  %v257_v52 = vpop.f32.mrf.mxu1 }
  0xd7   :  { %189 = vst [vmem:[#allocation2 + $0x20] sm:$0xff] %v139_v49  ;;  %197 = vst [vmem:[#allocation2 + $0x60] sm:$0xff] %v171_v50  ;;  %v150_v53 = vadd.f32 %v249_v51, %v217_v26  ;;  %v182_v54 = vadd.f32 %v257_v52, %v217_v26 }
  0xd8   :  { %v141_v55 = vpop.f32.mrf.mxu0  ;;  %v173_v56 = vpop.f32.mrf.mxu1 }
  0xd9   :  { %192 = vst [vmem:[#allocation2 + $0x38] sm:$0xff] %v150_v53  ;;  %200 = vst [vmem:[#allocation2 + $0x78] sm:$0xff] %v182_v54  ;;  %v142_v57 = vadd.f32 %v217_v26, %v141_v55  ;;  %v174_v58 = vadd.f32 %v217_v26, %v173_v56 }
  0xdb   :  { %190 = vst [vmem:[#allocation2 + $0x28] sm:$0xff] %v142_v57  ;;  %198 = vst [vmem:[#allocation2 + $0x68] sm:$0xff] %v174_v58 }
  0xdc   :  { %278 = shalt.err (!%p275_p4)
}
  0xdd   :  { %s290_s1 = smov 128   ;;  %s291_s23 = smov 8  }
  0xde   :  { %212 = dma.vmem_to_hbm [thread:$0]  %s207_s2, 2048, %s383_s3, [#allocation3], %s290_s1, %s290_s1, %s291_s23  }
  0xdf   :  { %287 = dma.done.wait [#allocation3], 2048  }
  0xe0   :  { %288 = vsyncadd [#allocation3], 4294965248 }
  0xe1   :  { %216 = vsyncpa [#allocation3], 1 }

</bundles_post_ra>
